<compile_context>
chip_gen: v5e
topology: v5e:2x2
jax: 0.10.0
libtpu: 0.0.40
codegen_flags: <defaults>
</compile_context>

<pallas_src>
import functools
import math

import jax
import jax.numpy as jnp
from jax import lax
from jax.experimental import pallas as pl
from jax.experimental.pallas import tpu as pltpu


# ---------------------------------------------------------------------------
# Kernel 1: per-head QKV projection into head-major layout (B, H, T, hd).
# Grid: (batch, row_tile, head) — every grid point writes a distinct block.
# ---------------------------------------------------------------------------
def _qkv_proj_kernel(x_ref, wq_ref, wk_ref, wv_ref, q_ref, k_ref, v_ref, *, scale):
    x = x_ref[0]                                                  # (Tr, E) native dtype
    q = lax.dot_general(x, wq_ref[0], (((1,), (0,)), ((), ())),
                        preferred_element_type=jnp.float32)
    q_ref[0, 0] = (q * scale).astype(q_ref.dtype)                 # fold 1/sqrt(hd)
    k = lax.dot_general(x, wk_ref[0], (((1,), (0,)), ((), ())),
                        preferred_element_type=jnp.float32)
    k_ref[0, 0] = k.astype(k_ref.dtype)
    v = lax.dot_general(x, wv_ref[0], (((1,), (0,)), ((), ())),
                        preferred_element_type=jnp.float32)
    v_ref[0, 0] = v.astype(v_ref.dtype)


# ---------------------------------------------------------------------------
# Kernel 2: flash attention over key tiles + folded per-head output projection.
# Grid: (batch, q_tile, head, k_tile); head & k_tile are reduction axes.
# ---------------------------------------------------------------------------
def _flash_proj_kernel(q_ref, k_ref, v_ref, wp_ref, o_ref, m_s, l_s, acc_s, out_s):
    h = pl.program_id(2)
    ki = pl.program_id(3)
    nh = pl.num_programs(2)
    nk = pl.num_programs(3)
    io_dtype = q_ref.dtype                                        # native MXU feed dtype

    # Zero the per-(batch, q-tile) output accumulator at the very first step.
    @pl.when((h == 0) & (ki == 0))
    def _():
        out_s[...] = jnp.zeros_like(out_s)

    # Per-head softmax state init.
    @pl.when(ki == 0)
    def _():
        m_s[...] = jnp.full_like(m_s, -jnp.inf)
        l_s[...] = jnp.zeros_like(l_s)
        acc_s[...] = jnp.zeros_like(acc_s)

    q = q_ref[0, 0]                                               # (Tq, hd), pre-scaled
    k = k_ref[0, 0]                                               # (Tk, hd)
    v = v_ref[0, 0]                                               # (Tk, hd)

    # Scores: contract head_dim on both operands (no explicit transpose).
    s = lax.dot_general(q, k, (((1,), (1,)), ((), ())),
                        preferred_element_type=jnp.float32)       # (Tq, Tk) f32

    # Online softmax update (statistics in f32).
    m_new = jnp.maximum(m_s[...], s.max(axis=-1, keepdims=True))
    alpha = jnp.exp(m_s[...] - m_new)
    p = jnp.exp(s - m_new)
    l_s[...] = alpha * l_s[...] + p.sum(axis=-1, keepdims=True)
    acc_s[...] = alpha * acc_s[...] + lax.dot_general(
        p.astype(io_dtype), v, (((1,), (0,)), ((), ())),
        preferred_element_type=jnp.float32)
    m_s[...] = m_new

    # Head finished: normalize and fold this head's slice of W_proj into out.
    @pl.when(ki == nk - 1)
    def _():
        y_h = acc_s[...] * pl.reciprocal(l_s[...], approx=True)   # (Tq, hd) f32
        out_s[...] += lax.dot_general(
            y_h.astype(io_dtype), wp_ref[0], (((1,), (0,)), ((), ())),
            preferred_element_type=jnp.float32)

    # All heads done for this (batch, q-tile): emit the output block.
    @pl.when((h == nh - 1) & (ki == nk - 1))
    def _():
        o_ref[0] = out_s[...].astype(o_ref.dtype)


def _pick_tile(t, cands=(256, 128, 64, 32, 16, 8)):
    for c in cands:
        if t % c == 0:
            return c
    return t


def causal_self_attention(x, w_attn_t, w_proj_t, *, num_heads,
                          q_tile=None, k_tile=None, row_tile=None):
    """x: [B, T, E]; w_attn_t: [E, 3E] (= W_attn.T); w_proj_t: [E, E] (= W_proj.T)."""
    B, T, E = x.shape
    assert E % num_heads == 0
    hd = E // num_heads
    scale = 1.0 / math.sqrt(hd)

    tq = q_tile or _pick_tile(T)
    tk = k_tile or _pick_tile(T)
    tr = row_tile or _pick_tile(T, (512, 256, 128, 64, 32, 16, 8))
    assert T % tq == 0 and T % tk == 0 and T % tr == 0

    # Host-side layout plumbing: per-head, lane-aligned weight blocks.
    wq = w_attn_t[:, 0 * E:1 * E].reshape(E, num_heads, hd).transpose(1, 0, 2)  # (H,E,hd)
    wk = w_attn_t[:, 1 * E:2 * E].reshape(E, num_heads, hd).transpose(1, 0, 2)  # (H,E,hd)
    wv = w_attn_t[:, 2 * E:3 * E].reshape(E, num_heads, hd).transpose(1, 0, 2)  # (H,E,hd)
    wp = w_proj_t.reshape(num_heads, hd, E)                                     # (H,hd,E)

    # ---- Kernel 1: QKV projection (computed once, head-major layout) ----
    qkv_shape = jax.ShapeDtypeStruct((B, num_heads, T, hd), x.dtype)
    q, k, v = pl.pallas_call(
        functools.partial(_qkv_proj_kernel, scale=scale),
        out_shape=(qkv_shape, qkv_shape, qkv_shape),
        grid_spec=pltpu.PrefetchScalarGridSpec(
            num_scalar_prefetch=0,
            grid=(B, T // tr, num_heads),
            in_specs=[
                pl.BlockSpec((1, tr, E), lambda b, r, h: (b, r, 0)),   # x rows
                pl.BlockSpec((1, E, hd), lambda b, r, h: (h, 0, 0)),   # Wq[h]
                pl.BlockSpec((1, E, hd), lambda b, r, h: (h, 0, 0)),   # Wk[h]
                pl.BlockSpec((1, E, hd), lambda b, r, h: (h, 0, 0)),   # Wv[h]
            ],
            out_specs=[
                pl.BlockSpec((1, 1, tr, hd), lambda b, r, h: (b, h, r, 0)),
                pl.BlockSpec((1, 1, tr, hd), lambda b, r, h: (b, h, r, 0)),
                pl.BlockSpec((1, 1, tr, hd), lambda b, r, h: (b, h, r, 0)),
            ]),
        compiler_params=pltpu.CompilerParams(
            dimension_semantics=("parallel", "parallel", "parallel"),
            vmem_limit_bytes=64 * 1024 * 1024),
    )(x, wq, wk, wv)

    # ---- Kernel 2: flash attention + folded output projection ----
    return pl.pallas_call(
        _flash_proj_kernel,
        out_shape=jax.ShapeDtypeStruct((B, T, E), x.dtype),
        grid_spec=pltpu.PrefetchScalarGridSpec(
            num_scalar_prefetch=0,
            grid=(B, T // tq, num_heads, T // tk),
            in_specs=[
                pl.BlockSpec((1, 1, tq, hd), lambda b, qi, h, ki: (b, h, qi, 0)),  # q
                pl.BlockSpec((1, 1, tk, hd), lambda b, qi, h, ki: (b, h, ki, 0)),  # k
                pl.BlockSpec((1, 1, tk, hd), lambda b, qi, h, ki: (b, h, ki, 0)),  # v
                pl.BlockSpec((1, hd, E), lambda b, qi, h, ki: (h, 0, 0)),          # Wproj[h]
            ],
            out_specs=pl.BlockSpec((1, tq, E), lambda b, qi, h, ki: (b, qi, 0)),
            scratch_shapes=[
                pltpu.VMEM((tq, 1), jnp.float32),   # running max
                pltpu.VMEM((tq, 1), jnp.float32),   # running denominator
                pltpu.VMEM((tq, hd), jnp.float32),  # running numerator
                pltpu.VMEM((tq, E), jnp.float32),   # output accumulator over heads
            ]),
        compiler_params=pltpu.CompilerParams(
            dimension_semantics=("parallel", "parallel", "arbitrary", "arbitrary"),
            vmem_limit_bytes=64 * 1024 * 1024),
    )(q, k, v, wp)


def _reference(x, w_attn_t, w_proj_t, num_heads):
    """Pure-JAX reference matching the PyTorch eval-mode forward (non-causal)."""
    B, T, E = x.shape
    hd = E // num_heads
    qkv = x @ w_attn_t
    q, k, v = jnp.split(qkv, 3, axis=-1)

    def to_heads(t):
        return t.reshape(B, T, num_heads, hd).transpose(0, 2, 1, 3)

    q, k, v = to_heads(q), to_heads(k), to_heads(v)
    s = jnp.einsum("bhqd,bhkd->bhqk", q, k) / math.sqrt(hd)
    p = jax.nn.softmax(s, axis=-1)
    y = jnp.einsum("bhqk,bhkd->bhqd", p, v)
    y = y.transpose(0, 2, 1, 3).reshape(B, T, E)
    return y @ w_proj_t


if __name__ == "__main__":
    # Small, module-consistent shapes: batch=2, seq=8, embed=32, heads=4.
    B, T, E, H = 2, 8, 32, 4

    key = jax.random.PRNGKey(0)
    kx, ka, kp = jax.random.split(key, 3)

    x = jax.random.normal(kx, (B, T, E), dtype=jnp.float32)
    bound = 1.0 / math.sqrt(E)
    w_attn_t = jax.random.uniform(ka, (E, 3 * E), jnp.float32, -bound, bound)
    w_proj_t = jax.random.uniform(kp, (E, E), jnp.float32, -bound, bound)

    # float32 path
    out = jax.block_until_ready(causal_self_attention(x, w_attn_t, w_proj_t, num_heads=H))
    ref = _reference(x, w_attn_t, w_proj_t, H)
    assert out.shape == (B, T, E)
    err = float(jnp.abs(out - ref).max())
    assert jnp.allclose(out, ref, atol=2e-3, rtol=2e-3), err

    # bf16 path: native-dtype MXU feeds with f32 accumulation inside the kernels.
    xb = x.astype(jnp.bfloat16)
    wab = w_attn_t.astype(jnp.bfloat16)
    wpb = w_proj_t.astype(jnp.bfloat16)
    outb = jax.block_until_ready(causal_self_attention(xb, wab, wpb, num_heads=H))
    refb = _reference(xb.astype(jnp.float32), wab.astype(jnp.float32),
                      wpb.astype(jnp.float32), H)
    assert outb.dtype == jnp.bfloat16
    errb = float(jnp.abs(outb.astype(jnp.float32) - refb).max())
    assert jnp.allclose(outb.astype(jnp.float32), refb, atol=5e-2, rtol=5e-2), errb

    print("KERNEL_OK")
</pallas_src>

<mosaic_0001>
module attributes {stable_mosaic.version = 11 : i64} {
  func.func @_qkv_proj_kernel(%arg0: i32, %arg1: i32, %arg2: i32, %arg3: memref<1x8x32xf32, #tpu.memory_space<vmem>>, %arg4: memref<1x32x8xf32, #tpu.memory_space<vmem>>, %arg5: memref<1x32x8xf32, #tpu.memory_space<vmem>>, %arg6: memref<1x32x8xf32, #tpu.memory_space<vmem>>, %arg7: memref<1x1x8x8xf32, #tpu.memory_space<vmem>>, %arg8: memref<1x1x8x8xf32, #tpu.memory_space<vmem>>, %arg9: memref<1x1x8x8xf32, #tpu.memory_space<vmem>>) attributes {dimension_semantics = [#tpu.dimension_semantics<parallel>, #tpu.dimension_semantics<parallel>, #tpu.dimension_semantics<parallel>], iteration_bounds = array<i64: 2, 1, 4>, scalar_prefetch = 0 : i64, scratch_operands = 0 : i64, tpu.core_type = #tpu.core_type<tc>, window_params = [{transform_indices = @transform_0, window_bounds = array<i64: 1, 8, 32>}, {transform_indices = @transform_1, window_bounds = array<i64: 1, 32, 8>}, {transform_indices = @transform_2, window_bounds = array<i64: 1, 32, 8>}, {transform_indices = @transform_3, window_bounds = array<i64: 1, 32, 8>}, {transform_indices = @transform_4, window_bounds = array<i64: 1, 1, 8, 8>}, {transform_indices = @transform_5, window_bounds = array<i64: 1, 1, 8, 8>}, {transform_indices = @transform_6, window_bounds = array<i64: 1, 1, 8, 8>}]} {
    %c0 = arith.constant 0 : index
    %c0_0 = arith.constant 0 : index
    %c0_1 = arith.constant 0 : index
    %0 = vector.load %arg3[%c0, %c0_0, %c0_1] : memref<1x8x32xf32, #tpu.memory_space<vmem>>, vector<1x8x32xf32>
    %1 = vector.shape_cast %0 : vector<1x8x32xf32> to vector<8x32xf32>
    %c0_2 = arith.constant 0 : index
    %c0_3 = arith.constant 0 : index
    %c0_4 = arith.constant 0 : index
    %2 = vector.load %arg4[%c0_2, %c0_3, %c0_4] : memref<1x32x8xf32, #tpu.memory_space<vmem>>, vector<1x32x8xf32>
    %3 = vector.shape_cast %2 : vector<1x32x8xf32> to vector<32x8xf32>
    %cst = arith.constant dense<0.000000e+00> : vector<8x8xf32>
    %4 = tpu.matmul %1, %3, %cst {dimension_numbers = #tpu.dot_dimension_numbers<[1], [0], [0], [1], [0, 0, 1, 1], [], []>} : vector<8x32xf32>, vector<32x8xf32>, vector<8x8xf32> -> vector<8x8xf32>
    %cst_5 = arith.constant 0.353553385 : f32
    %5 = vector.broadcast %cst_5 : f32 to vector<8x8xf32>
    %6 = arith.mulf %4, %5 : vector<8x8xf32>
    %c0_6 = arith.constant 0 : index
    %c0_7 = arith.constant 0 : index
    %c0_8 = arith.constant 0 : index
    %c0_9 = arith.constant 0 : index
    %7 = vector.load %arg7[%c0_6, %c0_7, %c0_8, %c0_9] : memref<1x1x8x8xf32, #tpu.memory_space<vmem>>, vector<1x1x8x8xf32>
    %8 = vector.shape_cast %7 : vector<1x1x8x8xf32> to vector<8x8xf32>
    %9 = vector.shape_cast %6 : vector<8x8xf32> to vector<1x1x8x8xf32>
    tpu.vector_store %arg7[%c0_6, %c0_7, %c0_8, %c0_9], %9 {strides = array<i32>} : memref<1x1x8x8xf32, #tpu.memory_space<vmem>>, vector<1x1x8x8xf32>,
    %c0_10 = arith.constant 0 : index
    %c0_11 = arith.constant 0 : index
    %c0_12 = arith.constant 0 : index
    %10 = vector.load %arg5[%c0_10, %c0_11, %c0_12] : memref<1x32x8xf32, #tpu.memory_space<vmem>>, vector<1x32x8xf32>
    %11 = vector.shape_cast %10 : vector<1x32x8xf32> to vector<32x8xf32>
    %cst_13 = arith.constant dense<0.000000e+00> : vector<8x8xf32>
    %12 = tpu.matmul %1, %11, %cst_13 {dimension_numbers = #tpu.dot_dimension_numbers<[1], [0], [0], [1], [0, 0, 1, 1], [], []>} : vector<8x32xf32>, vector<32x8xf32>, vector<8x8xf32> -> vector<8x8xf32>
    %c0_14 = arith.constant 0 : index
    %c0_15 = arith.constant 0 : index
    %c0_16 = arith.constant 0 : index
    %c0_17 = arith.constant 0 : index
    %13 = vector.load %arg8[%c0_14, %c0_15, %c0_16, %c0_17] : memref<1x1x8x8xf32, #tpu.memory_space<vmem>>, vector<1x1x8x8xf32>
    %14 = vector.shape_cast %13 : vector<1x1x8x8xf32> to vector<8x8xf32>
    %15 = vector.shape_cast %12 : vector<8x8xf32> to vector<1x1x8x8xf32>
    tpu.vector_store %arg8[%c0_14, %c0_15, %c0_16, %c0_17], %15 {strides = array<i32>} : memref<1x1x8x8xf32, #tpu.memory_space<vmem>>, vector<1x1x8x8xf32>,
    %c0_18 = arith.constant 0 : index
    %c0_19 = arith.constant 0 : index
    %c0_20 = arith.constant 0 : index
    %16 = vector.load %arg6[%c0_18, %c0_19, %c0_20] : memref<1x32x8xf32, #tpu.memory_space<vmem>>, vector<1x32x8xf32>
    %17 = vector.shape_cast %16 : vector<1x32x8xf32> to vector<32x8xf32>
    %cst_21 = arith.constant dense<0.000000e+00> : vector<8x8xf32>
    %18 = tpu.matmul %1, %17, %cst_21 {dimension_numbers = #tpu.dot_dimension_numbers<[1], [0], [0], [1], [0, 0, 1, 1], [], []>} : vector<8x32xf32>, vector<32x8xf32>, vector<8x8xf32> -> vector<8x8xf32>
    %c0_22 = arith.constant 0 : index
    %c0_23 = arith.constant 0 : index
    %c0_24 = arith.constant 0 : index
    %c0_25 = arith.constant 0 : index
    %19 = vector.load %arg9[%c0_22, %c0_23, %c0_24, %c0_25] : memref<1x1x8x8xf32, #tpu.memory_space<vmem>>, vector<1x1x8x8xf32>
    %20 = vector.shape_cast %19 : vector<1x1x8x8xf32> to vector<8x8xf32>
    %21 = vector.shape_cast %18 : vector<8x8xf32> to vector<1x1x8x8xf32>
    tpu.vector_store %arg9[%c0_22, %c0_23, %c0_24, %c0_25], %21 {strides = array<i32>} : memref<1x1x8x8xf32, #tpu.memory_space<vmem>>, vector<1x1x8x8xf32>,
    return
  }
  func.func @transform_0(%arg0: i32, %arg1: i32, %arg2: i32) -> (i32, i32, i32) {
    %c0_i32 = arith.constant 0 : i32
    %c0_i32_0 = arith.constant 0 : i32
    return %arg0, %arg1, %c0_i32 : i32, i32, i32
  }
  func.func @transform_1(%arg0: i32, %arg1: i32, %arg2: i32) -> (i32, i32, i32) {
    %c0_i32 = arith.constant 0 : i32
    %c0_i32_0 = arith.constant 0 : i32
    %c0_i32_1 = arith.constant 0 : i32
    return %arg2, %c0_i32, %c0_i32_0 : i32, i32, i32
  }
  func.func @transform_2(%arg0: i32, %arg1: i32, %arg2: i32) -> (i32, i32, i32) {
    %c0_i32 = arith.constant 0 : i32
    %c0_i32_0 = arith.constant 0 : i32
    %c0_i32_1 = arith.constant 0 : i32
    return %arg2, %c0_i32, %c0_i32_0 : i32, i32, i32
  }
  func.func @transform_3(%arg0: i32, %arg1: i32, %arg2: i32) -> (i32, i32, i32) {
    %c0_i32 = arith.constant 0 : i32
    %c0_i32_0 = arith.constant 0 : i32
    %c0_i32_1 = arith.constant 0 : i32
    return %arg2, %c0_i32, %c0_i32_0 : i32, i32, i32
  }
  func.func @transform_4(%arg0: i32, %arg1: i32, %arg2: i32) -> (i32, i32, i32, i32) {
    %c0_i32 = arith.constant 0 : i32
    %c0_i32_0 = arith.constant 0 : i32
    return %arg0, %arg2, %arg1, %c0_i32 : i32, i32, i32, i32
  }
  func.func @transform_5(%arg0: i32, %arg1: i32, %arg2: i32) -> (i32, i32, i32, i32) {
    %c0_i32 = arith.constant 0 : i32
    %c0_i32_0 = arith.constant 0 : i32
    return %arg0, %arg2, %arg1, %c0_i32 : i32, i32, i32, i32
  }
  func.func @transform_6(%arg0: i32, %arg1: i32, %arg2: i32) -> (i32, i32, i32, i32) {
    %c0_i32 = arith.constant 0 : i32
    %c0_i32_0 = arith.constant 0 : i32
    return %arg0, %arg2, %arg1, %c0_i32 : i32, i32, i32, i32
  }
}

</mosaic_0001>

<bundles_post_ra>
// kernel: tpu_custom_call.1
= control target key start
LH: loop header
LB: loop body
LE: loop exit
PB: predicated region body
PF: predicated region fallthrough
CT: control target
= control target key end

     0   :  { %s1222_s0 = inlined_call_operand.vmem [shape: f32[2,8,32], index: 0, kind: input, shape index: {}]   ;;  %s1223_s1 = inlined_call_operand.vmem [shape: f32[4,32,8], index: 1, kind: input, shape index: {}]   ;;  %s1224_s2 = inlined_call_operand.vmem [shape: f32[4,32,8], index: 2, kind: input, shape index: {}]   ;;  %s1225_s3 = inlined_call_operand.vmem [shape: f32[4,32,8], index: 3, kind: input, shape index: {}]   ;;  %s1226_s4 = inlined_call_operand.hbm [shape: f32[2,4,8,8], index: 4, kind: output, shape index: {0}]   ;;  %s1227_s5 = inlined_call_operand.hbm [shape: f32[2,4,8,8], index: 5, kind: output, shape index: {1}]   ;;  %s1228_s6 = inlined_call_operand.hbm [shape: f32[2,4,8,8], index: 6, kind: output, shape index: {2}]  }
   0x1   :  { %1239 = sst [smem:[#allocation13_spill]] %s1222_s0 }
   0x2   :  { %1240 = sst [smem:[#allocation14_spill]] %s1223_s1 }
   0x3   :  { %12 = vsyncpa [#allocation3], 0 }
   0x4   :  { %14 = vsyncpa [#allocation3 + $0x1], 0 }
   0x5   :  { %15 = vsyncpa [#allocation5], 0 }
   0x6   :  { %17 = vsyncpa [#allocation5 + $0x1], 0  ;;  %s1000_s21 = smov 0   ;;  %s1002_s22 = smov 0  }
   0x7   :  { %s1004_s23 = smov 0   ;;  %s1006_s24 = smov 0  }
   0x8   :  { %s1008_s25 = smov 0   ;;  %s1010_s26 = smov 0  }
   0x9   :  { %s1012_s27 = smov 0   ;;  %s1014_s28 = smov 0  }
   0xa LB: > { %s1230_s29 = sadd.s32 4294967295, %s963_s28   ;;  %s1229_s30 = sadd.s32 4294967294, %s963_s28   ;;  %s963_s28 = sphi %s1014_s28, %s23_s28   ;;  %s959_s27 = sphi %s1012_s27, %s1267_s27   ;;  %s955_s26 = sphi %s1010_s26, %s1266_s26   ;;  %s951_s25 = sphi %s1008_s25, %s1265_s25   ;;  %s947_s24 = sphi %s1006_s24, %s1264_s24   ;;  %s943_s23 = sphi %s1004_s23, %s1263_s23   ;;  %s939_s22 = sphi %s1002_s22, %s1262_s22   ;;  %s935_s21 = sphi %s1000_s21, %s1261_s21  }
   0xb   : > { %s35_s7 = sadd.s32 1, %s955_s26  ;;  %s42_s8 = sadd.s32 1, %s959_s27 }
   0xc   : > { %p36_p0 = scmp.ge.s32.totalorder %s35_s7, 4  ;;  %p169_p1 = scmp.ne.s32.totalorder %s943_s23, %s939_s22 }
   0xd   : > { %p170_p2 = scmp.eq.s32.totalorder %s1230_s29, 7  ;;  %p175_p5 = scmp.ne.s32.totalorder %s939_s22, %s935_s21 }
   0xe   : > { %s1269_s7 = smov (%p36_p0, %s35_s7), 0  ;;  %s1271_s8 = smov (!%p36_p0, %s42_s8), %s959_s27 }
   0xf   : > { %1241 = sst [smem:[#allocation9_spill]] %s1269_s7  ;;  %s153_s9 = ssub.s32 %s955_s26, %s1269_s7 }
  0x10   : > { %p1053_p3 = por %p170_p2, %p169_p1  ;;  %p44_p4 = scmp.ge.s32.totalorder %s1271_s8, 2 }
  0x11   : > { %p176_p6 = scmp.eq.s32.totalorder %s1229_s30, 7  ;;  %p700_p7 = scmp.ge.s32.totalorder %s963_s28, 1 }
  0x12   : > { %s1273_s8 = smov (%p44_p4, %s1271_s8), 0  ;;  %p288_p9 = scmp.lt.s32.totalorder %s963_s28, 9 }
  0x13   : > { %1243 = sst [smem:[#allocation10_spill]] %s1273_s8  ;;  %p1064_p8 = por %p176_p6, %p175_p5 }
  0x14   : > { %s152_s12 = ssub.s32 %s959_s27, %s1273_s8  ;;  %s159_s13 = sadd.s32 1, %s943_s23 }
  0x15   : > { %s154_s14 = sor.u32 %s153_s9, %s152_s12  ;;  %p289_p10 = pnand %p700_p7, %p288_p9 }
  0x16   : > { %p157_p11 = scmp.eq.s32.totalorder %s154_s14, 0 }
  0x17   : > { %292 = sbr.rel (%p289_p10) target bundleno = 211 (0xd3), region = 36 }
  0x18   : > { %s1073_s15 = scalar_select %p157_p11, %s943_s23, %s159_s13  }
  0x1c   : > { %p352_p12 = scmp.lt.s32.totalorder %s947_s24, 3  ;;  %p345_p13 = scmp.lt.s32.totalorder %s951_s25, 1  ;;  %vm372_vm0 = vcmask 261120   ;;  %vm397_vm1 = vcmask 64512  }
  0x1d   : > { %s1245_s1 = sld [smem:[#allocation14_spill]]  ;;  %s1247_s9 = sadd.s32 4294967295, %s963_s28  }
  0x1e   : > { %s353_s16 = scalar_select %p352_p12, %s947_s24, 3 }
  0x1f   : > { %s346_s17 = scalar_select %p345_p13, %s951_s25, 1 }
  0x20   : > { %s725_s18 = sshll.u32 %s353_s16, 5  ;;  %s1246_s0 = sld [smem:[#allocation13_spill]] }
  0x21   : > { %s366_s30 = scalar_lea.vmem %s1225_s3, %s725_s18  ;;  %s361_s8 = scalar_lea.vmem %s1224_s2, %s725_s18 }
  0x22   : > { %v427_v0 = vld [vmem:[%s366_s30 + $0x18] sm:$0xff]  ;;  %v426_v1 = vld [vmem:[%s366_s30 + $0x10] sm:$0xff]  ;;  %s704_s7 = sshll.u32 %s346_s17, 3  ;;  %v425_v5 = vld [vmem:[%s366_s30 + $0x8] sm:$0xff] }
  0x23   : > { %s356_s12 = scalar_lea.vmem %s1245_s1, %s725_s18  ;;  %440 = vmatpush.msra.mxu2 %v427_v0  ;;  %v402_v3 = vld [vmem:[%s361_s8 + $0x18] sm:$0xff]  ;;  %v401_v6 = vld [vmem:[%s361_s8 + $0x10] sm:$0xff]  ;;  %v400_v8 = vld [vmem:[%s361_s8 + $0x8] sm:$0xff] }
  0x24   : > { %v371_v2 = vld [vmem:[%s356_s12 + $0x18] sm:$0xff]  ;;  %v370_v4 = vld [vmem:[%s356_s12 + $0x10] sm:$0xff]  ;;  %415 = vmatpush.msra.mxu1 %v402_v3  ;;  %v369_v7 = vld [vmem:[%s356_s12 + $0x8] sm:$0xff] }
  0x25   : > { %388 = vmatpush.msra.mxu0 %v371_v2  ;;  %441 = vmatpush.msra.mxu2 %v426_v1  ;;  %v424_v9 = vld [vmem:[%s366_s30] sm:$0xff]  ;;  %s717_s30 = sshll.u32 %s951_s25, 2 }
  0x26   : > { %s351_s29 = scalar_lea.vmem %s1246_s0, %s704_s7  ;;  %416 = vmatpush.msra.mxu1 %v401_v6  ;;  %v368_v10 = vld [vmem:[%s356_s12] sm:$0xff]  ;;  %s1233_s7 = sand.u32 1, %s939_s22  }
  0x27   : > { %389 = vmatpush.msra.mxu0 %v370_v4  ;;  %442 = vmatpush.msra.mxu2 %v425_v5  ;;  %v367_v11 = vld [vmem:[%s351_s29] sm:$0xff]  ;;  %s1095_s17 = sshll.u32 %s1233_s7, 3  ;;  %s471_s18 = sadd.s32 %s947_s24, %s717_s30 }
  0x28   : > { %417 = vmatpush.msra.mxu1 %v400_v8  ;;  %v399_v12 = vld [vmem:[%s361_s8] sm:$0xff]  ;;  %s718_s20 = sshll.u32 %s471_s18, 3  ;;  %s1100_s8 = sand.u32 1, %s1247_s9  }
  0x29   : > { %390 = vmatpush.msra.mxu0 %v369_v7  ;;  %443 = vmatpush.msra.mxu2 %v424_v9  ;;  %s1234_s12 = scalar_lea.vmem [#allocation6], %s1095_s17  ;;  %s490_s25 = scalar_lea.hbm %s1227_s5, %s718_s20 }
  0x2a   : > { %713 = vmatmul.msk.f32.vlgmr.msra.gmra.mxu2 %vm372_vm0, %v367_v11  ;;  %418 = vmatpush.msra.mxu1 %v399_v12  ;;  %s1105_s13 = sshll.u32 %s1234_s12, 4  ;;  %s473_s7 = scalar_lea.hbm %s1226_s4, %s718_s20 }
  0x2b   : > { %391 = vmatpush.msra.mxu0 %v368_v10  ;;  %712 = vmatmul.msk.f32.vlgmr.msra.gmra.mxu1 %vm372_vm0, %v367_v11  ;;  %1248 = sst [smem:[#allocation11_spill]] %s1105_s13  ;;  %s337_s0 = scalar_lea.vmem [#allocation4], %s1095_s17 }
  0x2c   : > { %711 = vmatmul.msk.f32.vlgmr.msra.gmra.mxu0 %vm372_vm0, %v367_v11  ;;  %s1114_s1 = sshll.u32 %s337_s0, 4  ;;  %s507_s18 = scalar_lea.hbm %s1228_s6, %s718_s20  ;;  %s493_s1 = int_to_ptr.vmem [resolvable:$true] %s1114_s1 }
  0x2d   : > { %s1119_s9 = sshll.u32 %s490_s25, 4  ;;  %s1235_s12 = scalar_lea.vmem [#allocation2], %s1095_s17  ;;  %s495_s9 = int_to_ptr.hbm [resolvable:$true] %s1119_s9 }
  0x2e   : > { %s1124_s14 = sshll.u32 %s1235_s12, 4  ;;  %s1126_s16 = sshll.u32 %s473_s7, 4  ;;  %s476_s14 = int_to_ptr.vmem [resolvable:$true] %s1124_s14  ;;  %s478_s16 = int_to_ptr.hbm [resolvable:$true] %s1126_s16 }
  0x2f   : > { %s1129_s19 = sshll.u32 %s507_s18, 4  ;;  %s455_s20 = scalar_lea.sflag [#allocation5], %s1100_s8 }
  0x30   : > { %1249 = sst [smem:[#allocation12_spill]] %s1129_s19  ;;  %s823_s7 = sshra.s32 %s495_s9, 4  ;;  %s824_s7 = int_to_ptr.hbm [resolvable:$true] %s823_s7 }
  0x31   : > { %s825_s25 = scalar_lea.hbm %s824_s7, 8  ;;  %s829_s30 = scalar_lea.hbm %s1227_s5, 64 }
  0x32   : > { %p826_p0 = scmp.ne.s32.totalorder %s824_s7, %s825_s25  ;;  %p830_p4 = scmp.lt.s32.totalorder %s824_s7, %s1227_s5 }
  0x33   : > { %p831_p5 = scmp.lt.s32.totalorder %s829_s30, %s825_s25 }
  0x34   : > { %p827_p1 = pnand %p826_p0, %p1053_p3 }
  0x35   : > { %p832_p6 = por %p831_p5, %p830_p4 }
  0x36   : > { %p828_p2 = pneg %p827_p1 }
  0x38   : > { %p833_p7 = pnand %p832_p6, %p828_p2 }
  0xa8   : > { %v420_v15 = vpop.f32.mrf.mxu1 }
  0xa9   : > { %v393_v13 = vpop.f32.mrf.mxu0  ;;  %423 = vst.msk [vmem:[%s337_s0] sm:$0xff] %vm397_vm1, %v420_v15 }
  0xaa   : > { %v396_v14 = vmul.f32 0.35355338, %v393_v13 }
  0xab   : > { %836 = shalt.err (!%p833_p7)
}
  0xac   : > { %729 = dma.vmem_to_hbm [thread:$0]  (%p1053_p3), %s493_s1, 128, %s495_s9, %s455_s20  }
  0xad   : > { %s1250_s0 = scalar_lea.vmem [#allocation2], %s1095_s17  ;;  %s1251_s29 = sand.u32 1, %s939_s22  }
  0xae   : > { %398 = vst.msk [vmem:[%s1250_s0] sm:$0xff] %vm397_vm1, %v396_v14  ;;  %s450_s24 = scalar_lea.sflag [#allocation3], %s1251_s29  ;;  %s851_s12 = sshra.s32 %s478_s16, 4  ;;  %s852_s12 = int_to_ptr.hbm [resolvable:$true] %s851_s12 }
  0xaf   : > { %s853_s7 = scalar_lea.hbm %s852_s12, 8  ;;  %s857_s18 = scalar_lea.hbm %s1226_s4, 64 }
  0xb0   : > { %p854_p9 = scmp.ne.s32.totalorder %s852_s12, %s853_s7  ;;  %p858_p12 = scmp.lt.s32.totalorder %s852_s12, %s1226_s4 }
  0xb1   : > { %p859_p13 = scmp.lt.s32.totalorder %s857_s18, %s853_s7 }
  0xb2   : > { %p855_p10 = pnand %p854_p9, %p1053_p3 }
  0xb3   : > { %p860_p0 = por %p859_p13, %p858_p12 }
  0xb4   : > { %p856_p11 = pneg %p855_p10 }
  0xb6   : > { %p861_p1 = pnand %p860_p0, %p856_p11 }
  0xb8   : > { %864 = shalt.err (!%p861_p1)
}
  0xb9   : > { %s1252_s1 = sld [smem:[#allocation12_spill]]  ;;  %v445_v16 = vpop.f32.mrf.mxu2  ;;  %s1253_s9 = scalar_lea.vmem [#allocation6], %s1095_s17 }
  0xba   : > { %728 = dma.vmem_to_hbm [thread:$0]  (%p1053_p3), %s476_s14, 128, %s478_s16, %s450_s24   ;;  %448 = vst.msk [vmem:[%s1253_s9] sm:$0xff] %vm397_vm1, %v445_v16 }
  0xbb   : > { %s885_s7 = scalar_lea.hbm %s1228_s6, 64 }
  0xbf   : > { %s1254_s13 = int_to_ptr.hbm [resolvable:$true] %s1252_s1 }
  0xc0   : > { %s879_s19 = sshra.s32 %s1254_s13, 4  ;;  %s880_s19 = int_to_ptr.hbm [resolvable:$true] %s879_s19 }
  0xc1   : > { %s881_s0 = scalar_lea.hbm %s880_s19, 8  ;;  %p886_p6 = scmp.lt.s32.totalorder %s880_s19, %s1228_s6 }
  0xc2   : > { %p882_p2 = scmp.ne.s32.totalorder %s880_s19, %s881_s0  ;;  %p887_p7 = scmp.lt.s32.totalorder %s885_s7, %s881_s0 }
  0xc4   : > { %p883_p4 = pnand %p882_p2, %p1053_p3  ;;  %p888_p9 = por %p887_p7, %p886_p6 }
  0xc6   : > { %p884_p5 = pneg %p883_p4 }
  0xc8   : > { %p889_p10 = pnand %p888_p9, %p884_p5 }
  0xca   : > { %892 = shalt.err (!%p889_p10)
}
  0xcb   : > { %s1255_s17 = smov %s1254_s13  ;;  %s1256_s14 = sld [smem:[#allocation11_spill]] }
  0xd1   : > { %s1257_s16 = int_to_ptr.vmem [resolvable:$true] %s1256_s14 }
  0xd2   : > { %730 = dma.vmem_to_hbm [thread:$0]  (%p1053_p3), %s1257_s16, 128, %s1255_s17, %s455_s20  }
  0xd3 PF: > { %p744_p11 = scmp.ge.s32.totalorder %s963_s28, 2  ;;  %s523_s24 = sand.u32 1, %s935_s21  }
  0xd4   : > { %s524_s18 = scalar_lea.sflag [#allocation3], %s523_s24 }
  0xd5   : > { %p735_p12 = pnand %p744_p11, %p1064_p8 }
  0xd7   : > { %p736_p13 = pneg %p735_p12 }
  0xd9   : > { %926 = dma.done.wait (%p736_p13), %s524_s18, 128  }
  0xda   : > { %928 = vsyncadd (%p736_p13), %s524_s18, 4294967168  ;;  %s1258_s10 = sadd.s32 4294967294, %s963_s28  }
  0xdb   : > { %s533_s8 = sand.u32 1, %s1258_s10  }
  0xdc   : > { %s534_s9 = scalar_lea.sflag [#allocation5], %s533_s8 }
  0xdd   : > { %930 = dma.done.wait (%p736_p13), %s534_s9, 256  }
  0xde   : > { %932 = vsyncadd (%p736_p13), %s534_s9, 4294967040  ;;  %s23_s28 = sadd.s32 1, %s963_s28   ;;  %s1259_s11 = sld [smem:[#allocation9_spill]] }
  0xdf   : > { %p20_p3 = scmp.ge.s32.totalorder %s23_s28, 10   ;;  %s1260_s20 = sld [smem:[#allocation10_spill]] }
  0xe0   : > { %s1261_s21 = smov %s939_s22  ;;  %s1262_s22 = smov %s943_s23 }
  0xe1   : > { %s1263_s23 = smov %s1073_s15  ;;  %s1264_s24 = smov %s955_s26 }
  0xe2   : > { %s1265_s25 = smov %s959_s27  ;;  %22 = sbr.rel (!%p20_p3) target bundleno = 10 (0xa), region = 112 }
  0xe4   : > { %s1266_s26 = smov %s1259_s11 }
  0xe5   : > { %s1267_s27 = smov %s1260_s20 }
  0xe7   :  { %550 = vsyncpa [#allocation3], 1 }
  0xe8   :  { %552 = vsyncpa [#allocation3 + $0x1], 1 }
  0xe9   :  { %553 = vsyncpa [#allocation5], 1 }
  0xea   :  { %555 = vsyncpa [#allocation5 + $0x1], 1 }

</bundles_post_ra>
